<compile_context>
chip_gen: v5e
topology: v5e:2x2
jax: 0.10.0
libtpu: 0.0.40
codegen_flags: <defaults>
</compile_context>

<pallas_src>
import jax
import jax.numpy as jnp
from jax.experimental import pallas as pl
from jax.experimental.pallas import tpu as pltpu


def mlp_kernel(x_ref, w_ref, b_ref, o_ref):
    x = x_ref[...]                                    # (B, in_dim)        f32
    w = w_ref[...]                                    # (in_dim, out_dim)  f32 (pre-transposed)
    b = b_ref[...]                                    # (1, out_dim)       f32

    # Linear layer on the MXU, f32 accumulation.
    z = jnp.dot(x, w, preferred_element_type=jnp.float32) + b   # (B, out_dim)

    # Sigmoid (exact).  Values land in (0, 1).
    s = 1.0 / (1.0 + jnp.exp(-z))

    # Softmax over dim=0 (the batch axis), matching nn.Softmax(dim=0).
    # s is bounded in (0, 1) so exp cannot overflow -> no max-subtraction.
    e = jnp.exp(s)                                    # (B, out_dim)
    denom = jnp.sum(e, axis=0, keepdims=True)         # (1, out_dim)
    o_ref[...] = e / denom                            # exact normalize


@jax.jit
def mlp_forward(x, weight, bias):
    """x: (B, in_dim) f32; weight: (out_dim, in_dim) f32 (PyTorch layout);
    bias: (out_dim,) f32. Returns (B, out_dim) f32."""
    B, _ = x.shape
    out_dim = weight.shape[0]
    w_t = weight.T                                    # (in_dim, out_dim); trivial under jit
    b2d = bias.reshape(1, out_dim)                    # metadata-only under jit

    return pl.pallas_call(
        mlp_kernel,
        out_shape=jax.ShapeDtypeStruct((B, out_dim), jnp.float32),
        in_specs=[
            pl.BlockSpec(memory_space=pltpu.MemorySpace.VMEM),
            pl.BlockSpec(memory_space=pltpu.MemorySpace.VMEM),
            pl.BlockSpec(memory_space=pltpu.MemorySpace.VMEM),
        ],
        out_specs=pl.BlockSpec(memory_space=pltpu.MemorySpace.VMEM),
    )(x, w_t, b2d)


def reference_forward(x, weight, bias):
    y = x @ weight.T + bias
    y = jax.nn.sigmoid(y)
    return jax.nn.softmax(y, axis=0)


if __name__ == "__main__":
    # Small shapes consistent with the module: batch_size=5 default, in_dim=16, out_dim=2.
    batch_size = 5
    in_dim = 16
    out_dim = 2

    key = jax.random.PRNGKey(0)
    kx, kw, kb = jax.random.split(key, 3)

    # Deterministic parameter init mimicking nn.Linear (uniform +/- 1/sqrt(in_dim)).
    bound = 1.0 / jnp.sqrt(jnp.float32(in_dim))
    weight = jax.random.uniform(kw, (out_dim, in_dim), jnp.float32, -bound, bound)
    bias = jax.random.uniform(kb, (out_dim,), jnp.float32, -bound, bound)

    x = jax.random.normal(kx, (batch_size, in_dim), jnp.float32)

    out = mlp_forward(x, weight, bias)
    out = jax.block_until_ready(out)

    ref = reference_forward(x, weight, bias)
    assert out.shape == (batch_size, out_dim)
    assert jnp.allclose(out, ref, atol=1e-4, rtol=1e-4)
    # softmax(dim=0) => each class column sums to ~1 over the batch axis
    assert jnp.allclose(jnp.sum(out, axis=0), jnp.ones((out_dim,)), atol=1e-4)

    print("KERNEL_OK")
</pallas_src>

<mosaic_0001>
module attributes {stable_mosaic.version = 11 : i64} {
  func.func @mlp_kernel(%arg0: memref<5x16xf32, #tpu.memory_space<vmem>>, %arg1: memref<16x2xf32, #tpu.memory_space<vmem>>, %arg2: memref<1x2xf32, #tpu.memory_space<vmem>>, %arg3: memref<5x2xf32, #tpu.memory_space<vmem>>) attributes {dimension_semantics = [], scalar_prefetch = 0 : i64, scratch_operands = 0 : i64, tpu.core_type = #tpu.core_type<tc>} {
    %c0 = arith.constant 0 : index
    %c0_0 = arith.constant 0 : index
    %0 = vector.load %arg0[%c0, %c0_0] : memref<5x16xf32, #tpu.memory_space<vmem>>, vector<5x16xf32>
    %c0_1 = arith.constant 0 : index
    %c0_2 = arith.constant 0 : index
    %1 = vector.load %arg1[%c0_1, %c0_2] : memref<16x2xf32, #tpu.memory_space<vmem>>, vector<16x2xf32>
    %c0_3 = arith.constant 0 : index
    %c0_4 = arith.constant 0 : index
    %2 = vector.load %arg2[%c0_3, %c0_4] : memref<1x2xf32, #tpu.memory_space<vmem>>, vector<1x2xf32>
    %cst = arith.constant dense<0.000000e+00> : vector<5x2xf32>
    %3 = tpu.matmul %0, %1, %cst {dimension_numbers = #tpu.dot_dimension_numbers<[1], [0], [0], [1], [0, 0, 1, 1], [], []>} : vector<5x16xf32>, vector<16x2xf32>, vector<5x2xf32> -> vector<5x2xf32>
    %4 = vector.broadcast %2 : vector<1x2xf32> to vector<5x2xf32>
    %5 = arith.addf %3, %4 : vector<5x2xf32>
    %cst_5 = arith.constant 0.000000e+00 : f32
    %6 = vector.broadcast %cst_5 : f32 to vector<5x2xf32>
    %7 = arith.subf %6, %5 : vector<5x2xf32>
    %8 = math.exp %7 : vector<5x2xf32>
    %cst_6 = arith.constant 1.000000e+00 : f32
    %9 = vector.broadcast %cst_6 : f32 to vector<5x2xf32>
    %10 = arith.addf %9, %8 : vector<5x2xf32>
    %cst_7 = arith.constant 1.000000e+00 : f32
    %11 = vector.broadcast %cst_7 : f32 to vector<5x2xf32>
    %12 = arith.divf %11, %10 : vector<5x2xf32>
    %13 = math.exp %12 : vector<5x2xf32>
    %cst_8 = arith.constant dense<0.000000e+00> : vector<2xf32>
    %14 = vector.multi_reduction <add>, %13, %cst_8 [0] : vector<5x2xf32> to vector<2xf32>
    %15 = vector.shape_cast %14 : vector<2xf32> to vector<1x2xf32>
    %16 = vector.broadcast %15 : vector<1x2xf32> to vector<5x2xf32>
    %17 = arith.divf %13, %16 : vector<5x2xf32>
    %c0_9 = arith.constant 0 : index
    %c0_10 = arith.constant 0 : index
    %18 = vector.load %arg3[%c0_9, %c0_10] : memref<5x2xf32, #tpu.memory_space<vmem>>, vector<5x2xf32>
    tpu.vector_store %arg3[%c0_9, %c0_10], %17 {strides = array<i32>} : memref<5x2xf32, #tpu.memory_space<vmem>>, vector<5x2xf32>,
    return
  }
}

</mosaic_0001>

<bundles_post_ra>
// kernel: mlp_forward.1
= control target key start
LH: loop header
LB: loop body
LE: loop exit
PB: predicated region body
PF: predicated region fallthrough
CT: control target
= control target key end

     0   :  { %vm21_vm0 = vcmask 130048   ;;  %vm66_vm5 = vcmask 12288   ;;  %s141_s1 = inlined_call_operand.vmem [shape: f32[16,2], index: 1, kind: input, shape index: {}]   ;;  %s142_s0 = inlined_call_operand.vmem [shape: f32[5,16], index: 0, kind: input, shape index: {}]   ;;  %s143_s2 = inlined_call_operand.vmem [shape: f32[1,2], index: 2, kind: input, shape index: {}]   ;;  %s144_s3 = inlined_call_operand.vmem [shape: f32[5,2], index: 3, kind: output, shape index: {}]  }
   0x1   :  { %v16_v0 = vld [vmem:[%s141_s1 + $0x8] sm:$0xff]  ;;  %v15_v1 = vld [vmem:[%s141_s1] sm:$0xff] }
   0x2   :  { %39 = vmatpush.msra.mxu0 %v16_v0  ;;  %v14_v2 = vld [vmem:[%s142_s0] sm:$0x1f] }
   0x3   :  { %v95_v3 = vld [vmem:[%s143_s2] ss:$0 sm:$0xff] }
   0x4   :  { %40 = vmatpush.msra.mxu0 %v15_v1 }
   0x5   :  { %94 = vmatmul.msk.f32.vlgmr.msra.gmra.mxu0 %vm21_vm0, %v14_v2 }
  0x82   :  { %v42_v4 = vpop.f32.mrf.mxu0 }
  0x83   :  { %v43_v5 = vadd.f32 %v95_v3, %v42_v4 }
  0x85   :  { %v45_v6 = vsub.f32 0.0, %v43_v5 }
  0x87   :  { %v46_v7 = vmul.f32 1.442695, %v45_v6 }
  0x89   :  { %96 = vpow2.f32 %v46_v7 }
  0x8f   :  { %v97_v8 = vpop.eup %96 }
  0x90   :  { %v48_v9 = vadd.f32 1.0, %v97_v8 }
  0x92   :  { %98 = vrcp.f32 %v48_v9  ;;  %v60_v13 = vand.u32 2147483648, %v48_v9  ;;  %v58_v15 = vand.u32 2147483647, %v48_v9  ;;  %vm54_vm2 = vweird.f32 %v48_v9 }
  0x94   :  { %v61_v17 = vor.u32 1.1754944e-38, %v60_v13  ;;  %vm59_vm4 = vcmp.eq.f32.partialorder %v58_v15, 8.507059e+37 }
  0x98   :  { %v99_v10 = vpop.eup %98 }
  0x99   :  { %v50_v11 = vmul.f32 %v99_v10, %v48_v9  ;;  %vm55_vm1 = vweird.f32 %v99_v10 }
  0x9a   :  { %vm56_vm3 = vmor %vm54_vm2, %vm55_vm1 }
  0x9b   :  { %v51_v12 = vsub.f32 1.0, %v50_v11 }
  0x9d   :  { %v52_v14 = vmul.f32 %v99_v10, %v51_v12 }
  0x9f   :  { %v53_v16 = vadd.f32 %v99_v10, %v52_v14 }
  0xa1   :  { %v57_v18 = vsel %vm56_vm3, %v99_v10, %v53_v16 }
  0xa2   :  { %v62_v19 = vsel %vm59_vm4, %v61_v17, %v57_v18 }
  0xa3   :  { %v64_v20 = vmul.f32 1.442695, %v62_v19 }
  0xa5   :  { %100 = vpow2.f32 %v64_v20 }
  0xab   :  { %v101_v21 = vpop.eup %100 }
  0xac   :  { %v67_v22 = vsel %vm66_vm5, %v101_v21, 0.0 }
  0xad   :  { %v68_v23 = vrot.slane %v67_v22, 4 }
  0xaf   :  { %v69_v24 = vadd.f32 %v68_v23, %v67_v22 }
  0xb1   :  { %v70_v25 = vrot.slane %v69_v24, 2 }
  0xb3   :  { %v71_v26 = vadd.f32 %v70_v25, %v69_v24 }
  0xb5   :  { %v72_v27 = vrot.slane %v71_v26, 1 }
  0xb7   :  { %v73_v28 = vadd.f32 %v72_v27, %v71_v26 }
  0xb9   :  { %102 = vrcp.f32 %v73_v28  ;;  %v85_v32 = vand.u32 2147483648, %v73_v28  ;;  %v83_v34 = vand.u32 2147483647, %v73_v28  ;;  %vm79_vm7 = vweird.f32 %v73_v28 }
  0xbb   :  { %v86_v36 = vor.u32 1.1754944e-38, %v85_v32  ;;  %vm84_vm9 = vcmp.eq.f32.partialorder %v83_v34, 8.507059e+37 }
  0xbf   :  { %v103_v29 = vpop.eup %102 }
  0xc0   :  { %v75_v30 = vmul.f32 %v103_v29, %v73_v28  ;;  %vm80_vm6 = vweird.f32 %v103_v29 }
  0xc1   :  { %vm81_vm8 = vmor %vm79_vm7, %vm80_vm6 }
  0xc2   :  { %v76_v31 = vsub.f32 1.0, %v75_v30 }
  0xc4   :  { %v77_v33 = vmul.f32 %v103_v29, %v76_v31 }
  0xc6   :  { %v78_v35 = vadd.f32 %v103_v29, %v77_v33 }
  0xc8   :  { %v82_v37 = vsel %vm81_vm8, %v103_v29, %v78_v35 }
  0xc9   :  { %v87_v38 = vsel %vm84_vm9, %v86_v36, %v82_v37 }
  0xca   :  { %v88_v39 = vmul.f32 %v101_v21, %v87_v38 }
  0xcc   :  { %89 = vst.msk [vmem:[%s144_s3] sm:$0x1f] %vm66_vm5, %v88_v39 }

</bundles_post_ra>
